<compile_context>
chip_gen: v7x
topology: tpu7x:2x2x1
jax: 0.10.0
libtpu: 0.0.40
codegen_flags: <defaults>
</compile_context>

<pallas_src>
import functools
import numpy as np
import jax
import jax.numpy as jnp
from jax import lax
from jax.experimental import pallas as pl
from jax.experimental.pallas import tpu as pltpu

STRIDES = [8, 16, 32]
TILE_NP = 2048     # lane tile for the obj-mask (pred-vs-truth IoU) kernel


def _round_up(x, m):
    return (x + m - 1) // m * m


def _pick_tile_n(M, n_ch):
    # Per-generation-safe sizing: each grid step moves several MB (hides the ~0.35us
    # per-step overhead on v5e/v6e) while the double-buffered input set
    # 2*(2*n_ch+2)*tile_n*4B stays well under v7x's 64 MiB VMEM.
    preferred = 16384 if n_ch <= 32 else 8192
    m128 = _round_up(M, 128)
    tn = min(preferred, m128)
    # keep >= 2 grid tiles whenever possible so v7x can shard across both TensorCores
    if tn == m128 and m128 >= 256:
        tn = _round_up(m128 // 2, 128)
    return tn


# --------------------------------------------------------------------------------------
# Pallas kernel 1: pred-vs-truth IoU ignore threshold  ->  base obj_mask
#   pred block : (1, 4, tile_np)   x,y,w,h as sublanes, cells lane-dense
#   truth (SMEM): (B, maxN*5)      per label [left, top, right, bottom, thr*area]
#   out block  : (1, 1, tile_np)   1.0 where max-IoU <= ignore_thresh
# --------------------------------------------------------------------------------------
def _objmask_kernel(pred_ref, truth_ref, out_ref, *, ignore_thresh, max_n):
    b = pl.program_id(0)
    thr = ignore_thresh
    p = pred_ref[0]                                   # (4, T)
    half_w = p[2:3, :] * 0.5
    half_h = p[3:4, :] * 0.5
    p_l = p[0:1, :] - half_w
    p_r = p[0:1, :] + half_w
    p_t = p[1:2, :] - half_h
    p_b = p[1:2, :] + half_h
    rhs_p = (p[2:3, :] * p[3:4, :]) * thr             # thr * area_pred  (1, T)
    one_plus = 1.0 + thr

    def body(n, hit):
        off = n * 5
        t_l = truth_ref[b, off + 0]
        t_t = truth_ref[b, off + 1]
        t_r = truth_ref[b, off + 2]
        t_b = truth_ref[b, off + 3]
        t_ar = truth_ref[b, off + 4]                  # thr * area_truth (pre-scaled)
        ix_l = jnp.maximum(p_l, t_l)
        ix_r = jnp.minimum(p_r, t_r)
        iy_t = jnp.maximum(p_t, t_t)
        iy_b = jnp.minimum(p_b, t_b)
        raw = (ix_r - ix_l) * (iy_b - iy_t)
        # iou > thr  <=>  area_i*(1+thr) > thr*(area_p + area_t); enclosure folded in.
        # Zero-padded labels give a degenerate box at the origin -> never exceed.
        exceed = (ix_l < ix_r) & (iy_t < iy_b) & (raw * one_plus > rhs_p + t_ar)
        return hit | exceed

    hit = lax.fori_loop(0, max_n, body,
                        jnp.zeros(p_l.shape, dtype=jnp.bool_),
                        unroll=(max_n <= 32))
    out_ref[...] = (1.0 - hit.astype(jnp.float32))[None]


def objmask_pallas(pred_t, truth_smem, ignore_thresh, tile_np, max_n):
    """pred_t: (B, 4, Np_pad) pixel boxes, truth_smem: (B, maxN*5) -> (B, Np_pad)."""
    B, _, Npp = pred_t.shape
    kernel = functools.partial(_objmask_kernel,
                               ignore_thresh=float(ignore_thresh), max_n=int(max_n))
    out = pl.pallas_call(
        kernel,
        out_shape=jax.ShapeDtypeStruct((B, 1, Npp), jnp.float32),
        grid_spec=pltpu.PrefetchScalarGridSpec(
            num_scalar_prefetch=0,
            grid=(B, Npp // tile_np),
            in_specs=[pl.BlockSpec((1, 4, tile_np), lambda b, j: (b, 0, j)),
                      pl.BlockSpec(memory_space=pltpu.MemorySpace.SMEM)],
            out_specs=pl.BlockSpec((1, 1, tile_np), lambda b, j: (b, 0, j))),
        compiler_params=pltpu.CompilerParams(
            dimension_semantics=("parallel", "parallel")),
    )(pred_t, truth_smem)
    return out[:, 0, :]


# --------------------------------------------------------------------------------------
# Pallas kernel 2: fused masked BCE/MSE loss reduction, channel-major lane-dense layout.
#   inputs : out/tgt (n_ch, tile_n), aux (2, tile_n)  [row0 = tgt_scale, row1 = obj_mask]
#   output : one (8, 128) tile per grid step, partial sum stored at [0, 0]
# --------------------------------------------------------------------------------------
def _loss_kernel(out_ref, tgt_ref, aux_ref, part_ref):
    o = out_ref[...]                                   # (n_ch, T)
    t = tgt_ref[...]                                   # (n_ch, T)
    s = aux_ref[0:1, :]                                # (1, T) tgt_scale (0 off matched)
    om = aux_ref[1:2, :]                               # (1, T) obj_mask

    # xy (rows 0:2): fractional targets -> two-log BCE, weighted by scale^2
    # (weight is 0 off matched cells, so explicit tgt_mask multiplies are not needed).
    o_xy = o[0:2, :]
    t_xy = t[0:2, :]
    bce_xy = -(t_xy * jnp.maximum(jnp.log(o_xy), -100.0)
               + (1.0 - t_xy) * jnp.maximum(jnp.log(1.0 - o_xy), -100.0))
    lane = (s * s) * jnp.sum(bce_xy, axis=0, keepdims=True)

    # wh (rows 2:4): scaled MSE / 2 (scale == 0 off matched cells -> no mask needed).
    d = (o[2:4, :] - t[2:4, :]) * s
    lane = lane + 0.5 * jnp.sum(d * d, axis=0, keepdims=True)

    # obj + cls (rows 4:): targets are exactly {0,1} -> single-log BCE.
    o_oc = o[4:, :]
    t_oc = t[4:, :]
    nll = -jnp.maximum(jnp.log(jnp.where(t_oc > 0.5, o_oc, 1.0 - o_oc)), -100.0)
    lane = lane + om * nll[0:1, :]
    tm = (s > 0.0).astype(jnp.float32)                 # tgt_mask == (scale > 0)
    lane = lane + tm * jnp.sum(nll[1:, :], axis=0, keepdims=True)

    total = jnp.sum(lane)
    r8 = lax.broadcasted_iota(jnp.int32, (8, 128), 0)
    c8 = lax.broadcasted_iota(jnp.int32, (8, 128), 1)
    part_ref[...] = jnp.where((r8 == 0) & (c8 == 0), total, 0.0)


def fused_loss_pallas(out_cm, tgt_cm, aux_cm, tile_n):
    n_ch, Mp = out_cm.shape
    n_tiles = Mp // tile_n
    step_bytes = (2 * n_ch + 2) * tile_n * 4 + 8 * 128 * 4
    vmem_limit = int(min(max(2 * step_bytes + (4 << 20), 32 << 20), 64 << 20))
    partials = pl.pallas_call(
        _loss_kernel,
        out_shape=jax.ShapeDtypeStruct((n_tiles * 8, 128), jnp.float32),
        grid_spec=pltpu.PrefetchScalarGridSpec(
            num_scalar_prefetch=0,
            grid=(n_tiles,),
            in_specs=[pl.BlockSpec((n_ch, tile_n), lambda i: (0, i)),
                      pl.BlockSpec((n_ch, tile_n), lambda i: (0, i)),
                      pl.BlockSpec((2, tile_n), lambda i: (0, i))],
            out_specs=pl.BlockSpec((8, 128), lambda i: (i, 0))),
        compiler_params=pltpu.CompilerParams(
            dimension_semantics=("parallel",),
            vmem_limit_bytes=vmem_limit),
    )(out_cm, tgt_cm, aux_cm)
    return jnp.sum(partials)


# --------------------------------------------------------------------------------------
# Plain-JAX references (for validation of both kernels; faithful port of the PyTorch
# masking + loss formulation)
# --------------------------------------------------------------------------------------
def objmask_ref(pred_t, truth, valid, thresh):
    p = jnp.transpose(pred_t, (0, 2, 1))[:, None, :, :]      # (B, 1, Npp, 4)
    t = truth[:, :, None, :]                                 # (B, maxN, 1, 4)
    tl = jnp.maximum(p[..., :2] - p[..., 2:] * 0.5, t[..., :2] - t[..., 2:] * 0.5)
    br = jnp.minimum(p[..., :2] + p[..., 2:] * 0.5, t[..., :2] + t[..., 2:] * 0.5)
    en = jnp.prod((tl < br).astype(jnp.float32), axis=-1)
    area_i = jnp.prod(br - tl, axis=-1) * en
    area_p = p[..., 2] * p[..., 3]
    area_t = t[..., 2] * t[..., 3]
    iou = area_i / (area_p + area_t - area_i)
    iou = jnp.where(valid[:, :, None], iou, -1.0)
    best = jnp.max(iou, axis=1)                              # (B, Npp)
    return (best <= thresh).astype(jnp.float32)


def loss_ref_cm(out_cm, tgt_cm, aux_cm, ridx_all, Mp):
    n_ch = out_cm.shape[0]
    tmask = jnp.zeros((Mp,), jnp.float32).at[ridx_all].set(1.0, mode='drop')
    omask = aux_cm[1]
    scale = aux_cm[0]
    m = jnp.concatenate([jnp.broadcast_to(tmask[None], (4, Mp)),
                         omask[None],
                         jnp.broadcast_to(tmask[None], (n_ch - 5, Mp))], axis=0)
    s2 = jnp.broadcast_to(scale[None], (2, Mp))
    o = out_cm * m
    t = tgt_cm * m
    o = o.at[2:4].multiply(s2)
    t = t.at[2:4].multiply(s2)

    def bce(p, q):
        return -(q * jnp.maximum(jnp.log(p), -100.0)
                 + (1.0 - q) * jnp.maximum(jnp.log(1.0 - p), -100.0))

    loss_xy = jnp.sum(s2 * s2 * bce(o[0:2], t[0:2]))
    loss_wh = 0.5 * jnp.sum((o[2:4] - t[2:4]) ** 2)
    loss_obj = jnp.sum(bce(o[4:5], t[4:5]))
    loss_cls = jnp.sum(bce(o[5:], t[5:]))
    return loss_xy + loss_wh + loss_obj + loss_cls


# --------------------------------------------------------------------------------------
# build_target glue: anchor matching + scatter into channel-major (n_ch, M) / aux (2, M)
# --------------------------------------------------------------------------------------
def build_loss_inputs(outputs, labels, cfg, ignore_thresh, use_pallas=True,
                      tile_np=TILE_NP):
    anchors = jnp.asarray(cfg['ANCHORS'], jnp.float32)               # (9, 2) pixels
    anchor_mask = cfg['ANCHOR_MASK']
    n_classes = cfg['N_CLASSES']
    n_ch = 5 + n_classes
    B = outputs[0]['output'].shape[0]
    A = outputs[0]['output'].shape[1]
    maxN = labels.shape[1]

    labels = labels.astype(jnp.float32)
    lx, ly, lw, lh = labels[..., 0], labels[..., 1], labels[..., 2], labels[..., 3]
    lcls = labels[..., 4].astype(jnp.int32)
    nlabel = jnp.sum((jnp.sum(labels, axis=2) > 0).astype(jnp.int32), axis=1)
    valid = jnp.arange(maxN)[None, :] < nlabel[:, None]              # (B, maxN)

    # best reference anchor per label (anchor-shape IoU; scale invariant -> pixel units)
    ref_w, ref_h = anchors[:, 0], anchors[:, 1]
    min_w = jnp.minimum(lw[..., None], ref_w[None, None, :])
    min_h = jnp.minimum(lh[..., None], ref_h[None, None, :])
    inter = min_w * min_h * ((min_w > 0) & (min_h > 0)).astype(jnp.float32)
    a_iou = inter / ((lw * lh)[..., None] + (ref_w * ref_h)[None, None, :] - inter)
    best_n_all = jnp.argmax(a_iou, axis=-1)                          # (B, maxN)
    best_n = best_n_all % 3

    # layer geometry (fused M ordering = layer-major, then (b, a, j, i) row-major)
    layer_info = []
    np_off, m_off = 0, 0
    for od in outputs:
        F = od['output'].shape[2]
        stride = float(STRIDES[od['layer_no']])
        Np_l = A * F * F
        layer_info.append((od, F, stride, Np_l, np_off, m_off))
        np_off += Np_l
        m_off += B * Np_l
    Np_tot, M = np_off, m_off

    # ----- fused base obj_mask from pred-vs-truth IoU (kernel 1), all layers at once -----
    preds_pix = [od['pred'].reshape(B, -1, 4).astype(jnp.float32) * stride
                 for (od, F, stride, Np_l, no, mo) in layer_info]
    pred_cat = jnp.concatenate(preds_pix, axis=1)                    # (B, Np_tot, 4)
    tnp = min(tile_np, _round_up(Np_tot, 128))
    Np_pad = _round_up(Np_tot, tnp)
    pred_t = jnp.transpose(pred_cat, (0, 2, 1))                      # (B, 4, Np_tot)
    if Np_pad > Np_tot:
        pred_t = jnp.pad(pred_t, ((0, 0), (0, 0), (0, Np_pad - Np_tot)))
    if use_pallas:
        # truth packed as [left, top, right, bottom, thr*area] per label for SMEM reads
        truth_pack = jnp.stack(
            [lx - lw * 0.5, ly - lh * 0.5, lx + lw * 0.5, ly + lh * 0.5,
             lw * lh * float(ignore_thresh)], axis=-1).reshape(B, maxN * 5)
        obj_cat = objmask_pallas(pred_t, truth_pack, ignore_thresh, tnp, maxN)
    else:
        obj_cat = objmask_ref(pred_t, labels[..., 0:4], valid, ignore_thresh)
    obj_flat = jnp.concatenate(
        [obj_cat[:, no:no + Np_l].reshape(B * Np_l)
         for (od, F, stride, Np_l, no, mo) in layer_info], axis=0)   # (M,)

    # ----- per-layer matched cells -> scatter into channel-major arrays -----
    bidx = jnp.broadcast_to(jnp.arange(B)[:, None], (B, maxN))
    one_hot = jax.nn.one_hot(lcls, n_classes, dtype=jnp.float32)     # (B, maxN, nc)
    ridx_l, vec_l, scale_l = [], [], []
    for (od, F, stride, Np_l, no, mo) in layer_info:
        am = anchor_mask[od['layer_no']]
        m_anch = anchors[jnp.asarray(am)] / stride                   # (3, 2) grid units
        tx, ty, tw, th = lx / stride, ly / stride, lw / stride, lh / stride
        ti = tx.astype(jnp.int32)
        tj = ty.astype(jnp.int32)
        bmask = (best_n_all == am[0]) | (best_n_all == am[1]) | (best_n_all == am[2])
        sel = valid & bmask
        r = mo + (bidx * A + best_n) * (F * F) + tj * F + ti
        ridx_l.append(jnp.where(sel, r, jnp.int32(1 << 30)))         # OOB sentinel -> drop
        aw = m_anch[:, 0][best_n]
        ah = m_anch[:, 1][best_n]
        vec = jnp.concatenate([
            (tx - ti.astype(jnp.float32))[..., None],
            (ty - tj.astype(jnp.float32))[..., None],
            jnp.log(tw / aw + 1e-16)[..., None],
            jnp.log(th / ah + 1e-16)[..., None],
            jnp.ones((B, maxN, 1), jnp.float32),
            one_hot], axis=-1)                                       # (B, maxN, n_ch)
        vec_l.append(vec)
        scale_l.append(jnp.sqrt(2.0 - tw * th / (F * F)))            # (B, maxN)

    ridx_all = jnp.concatenate([r.reshape(-1) for r in ridx_l])                      # (K,)
    vec_all = jnp.concatenate([v.reshape(-1, n_ch) for v in vec_l], axis=0).T        # (n_ch, K)
    scale_all = jnp.concatenate([sv.reshape(-1) for sv in scale_l])                  # (K,)

    tn = _pick_tile_n(M, n_ch)
    Mp = _round_up(M, tn)

    # TODO(synk): duplicate (b, anchor, j, i) assignments resolve in unspecified order in
    # this vectorized scatter, whereas PyTorch's sequential per-label loop is last-write-wins.
    tgt_cm = jnp.zeros((n_ch, Mp), jnp.float32).at[:, ridx_all].set(vec_all, mode='drop')
    # aux row 0 = tgt_scale (nonzero exactly on matched cells -> also encodes tgt_mask),
    # aux row 1 = obj_mask (IoU ignore mask, forced to 1 on matched cells).
    aux_cm = jnp.zeros((2, Mp), jnp.float32)
    aux_cm = aux_cm.at[1, :M].set(obj_flat)
    aux_cm = aux_cm.at[0, ridx_all].set(scale_all, mode='drop')
    aux_cm = aux_cm.at[1, ridx_all].set(1.0, mode='drop')

    # output: single transpose pass to the lane-dense channel-major layout (+ tail pad)
    out_flat = jnp.concatenate(
        [od['output'].reshape(-1, n_ch).astype(jnp.float32)
         for (od, F, stride, Np_l, no, mo) in layer_info], axis=0)   # (M, n_ch)
    out_cm = jnp.transpose(out_flat)                                 # (n_ch, M)
    if Mp > M:
        out_cm = jnp.pad(out_cm, ((0, 0), (0, Mp - M)))

    return dict(out_cm=out_cm, tgt_cm=tgt_cm, aux_cm=aux_cm, tile_n=tn,
                ridx_all=ridx_all, M=M, Mp=Mp)


# --------------------------------------------------------------------------------------
# forward
# --------------------------------------------------------------------------------------
def yolo_loss_pallas(outputs, targets, cfg, ignore_thresh=0.7):
    inp = build_loss_inputs(outputs, targets['padded_labels'], cfg, ignore_thresh,
                            use_pallas=True)
    return fused_loss_pallas(inp['out_cm'], inp['tgt_cm'], inp['aux_cm'], inp['tile_n'])


def yolo_loss_ref(outputs, targets, cfg, ignore_thresh=0.7):
    inp = build_loss_inputs(outputs, targets['padded_labels'], cfg, ignore_thresh,
                            use_pallas=False)
    return loss_ref_cm(inp['out_cm'], inp['tgt_cm'], inp['aux_cm'],
                       inp['ridx_all'], inp['Mp'])


if __name__ == "__main__":
    cfg = {
        'ANCHORS': [(6, 8), (9, 12), (13, 17), (18, 24), (24, 32),
                    (30, 40), (38, 48), (46, 56), (54, 60)],
        'ANCHOR_MASK': [[0, 1, 2], [3, 4, 5], [6, 7, 8]],
        'N_CLASSES': 3,
    }
    B, maxN, img = 2, 8, 64
    n_classes = cfg['N_CLASSES']
    n_ch = 5 + n_classes

    key = jax.random.PRNGKey(0)
    k_xy, k_wh, k_cls, k_layers = jax.random.split(key, 4)

    # padded labels: [x, y, w, h, class] in image pixels, zero-padded at the end
    xy = jax.random.uniform(k_xy, (B, maxN, 2), minval=4.0, maxval=60.0)
    wh = jax.random.uniform(k_wh, (B, maxN, 2), minval=4.0, maxval=28.0)
    cls = jax.random.randint(k_cls, (B, maxN, 1), 0, n_classes).astype(jnp.float32)
    labels = jnp.concatenate([xy, wh, cls], axis=-1)
    nvalid = jnp.array([5, 3])
    lab_mask = (jnp.arange(maxN)[None, :] < nvalid[:, None]).astype(jnp.float32)
    labels = labels * lab_mask[..., None]
    targets = {'padded_labels': labels}

    outputs = []
    lkeys = jax.random.split(k_layers, 9)
    for layer_no in range(3):
        F = img // STRIDES[layer_no]
        ko, kp1, kp2 = lkeys[3 * layer_no], lkeys[3 * layer_no + 1], lkeys[3 * layer_no + 2]
        # output channels assumed post-sigmoid (BCE requires values in (0,1))
        output = jax.nn.sigmoid(jax.random.normal(ko, (B, 3, F, F, n_ch), jnp.float32))
        pxy = jax.random.uniform(kp1, (B, 3, F, F, 2), minval=0.0, maxval=float(F))
        pwh = jax.random.uniform(kp2, (B, 3, F, F, 2), minval=0.5, maxval=float(F) / 2)
        pred = jnp.concatenate([pxy, pwh], axis=-1)   # decoded boxes in grid units (xywh)
        outputs.append({'layer_no': layer_no, 'output': output, 'pred': pred})

    loss = jax.block_until_ready(yolo_loss_pallas(outputs, targets, cfg))
    loss_ref = jax.block_until_ready(yolo_loss_ref(outputs, targets, cfg))
    np.testing.assert_allclose(np.asarray(loss), np.asarray(loss_ref), rtol=5e-3, atol=1e-2)
    print("KERNEL_OK")
</pallas_src>

<mosaic_0001>
module attributes {stable_mosaic.version = 11 : i64} {
  func.func @_objmask_kernel(%arg0: i32, %arg1: i32, %arg2: memref<1x4x256xf32, #tpu.memory_space<vmem>>, %arg3: memref<2x40xf32, #tpu.memory_space<smem>>, %arg4: memref<1x1x256xf32, #tpu.memory_space<vmem>>) attributes {dimension_semantics = [#tpu.dimension_semantics<parallel>, #tpu.dimension_semantics<parallel>], iteration_bounds = array<i64: 2, 1>, scalar_prefetch = 0 : i64, scratch_operands = 0 : i64, tpu.core_type = #tpu.core_type<tc>, window_params = [{transform_indices = @transform_0, window_bounds = array<i64: 1, 4, 256>}, {transform_indices = @transform_1, window_bounds = array<i64: 2, 40>}, {transform_indices = @transform_2, window_bounds = array<i64: 1, 1, 256>}]} {
    %c0 = arith.constant 0 : index
    %c0_0 = arith.constant 0 : index
    %c0_1 = arith.constant 0 : index
    %0 = vector.load %arg2[%c0, %c0_0, %c0_1] : memref<1x4x256xf32, #tpu.memory_space<vmem>>, vector<1x4x256xf32>
    %1 = vector.shape_cast %0 : vector<1x4x256xf32> to vector<4x256xf32>
    %2 = vector.extract_strided_slice %1 {offsets = [2, 0], sizes = [1, 256], strides = [1, 1]} : vector<4x256xf32> to vector<1x256xf32>
    %cst = arith.constant 5.000000e-01 : f32
    %3 = vector.broadcast %cst : f32 to vector<1x256xf32>
    %4 = arith.mulf %2, %3 : vector<1x256xf32>
    %5 = vector.extract_strided_slice %1 {offsets = [3, 0], sizes = [1, 256], strides = [1, 1]} : vector<4x256xf32> to vector<1x256xf32>
    %cst_2 = arith.constant 5.000000e-01 : f32
    %6 = vector.broadcast %cst_2 : f32 to vector<1x256xf32>
    %7 = arith.mulf %5, %6 : vector<1x256xf32>
    %8 = vector.extract_strided_slice %1 {offsets = [0, 0], sizes = [1, 256], strides = [1, 1]} : vector<4x256xf32> to vector<1x256xf32>
    %9 = arith.subf %8, %4 : vector<1x256xf32>
    %10 = vector.extract_strided_slice %1 {offsets = [0, 0], sizes = [1, 256], strides = [1, 1]} : vector<4x256xf32> to vector<1x256xf32>
    %11 = arith.addf %10, %4 : vector<1x256xf32>
    %12 = vector.extract_strided_slice %1 {offsets = [1, 0], sizes = [1, 256], strides = [1, 1]} : vector<4x256xf32> to vector<1x256xf32>
    %13 = arith.subf %12, %7 : vector<1x256xf32>
    %14 = vector.extract_strided_slice %1 {offsets = [1, 0], sizes = [1, 256], strides = [1, 1]} : vector<4x256xf32> to vector<1x256xf32>
    %15 = arith.addf %14, %7 : vector<1x256xf32>
    %16 = vector.extract_strided_slice %1 {offsets = [2, 0], sizes = [1, 256], strides = [1, 1]} : vector<4x256xf32> to vector<1x256xf32>
    %17 = vector.extract_strided_slice %1 {offsets = [3, 0], sizes = [1, 256], strides = [1, 1]} : vector<4x256xf32> to vector<1x256xf32>
    %18 = arith.mulf %16, %17 : vector<1x256xf32>
    %cst_3 = arith.constant 0.699999988 : f32
    %19 = vector.broadcast %cst_3 : f32 to vector<1x256xf32>
    %20 = arith.mulf %18, %19 : vector<1x256xf32>
    %false = arith.constant false
    %21 = vector.broadcast %false : i1 to vector<1x256xi1>
    %c0_i32 = arith.constant 0 : i32
    %c5_i32 = arith.constant 5 : i32
    %22 = arith.muli %c0_i32, %c5_i32 : i32
    %c0_i32_4 = arith.constant 0 : i32
    %23 = arith.addi %22, %c0_i32_4 : i32
    %24 = arith.index_cast %arg0 : i32 to index
    %25 = arith.index_cast %23 : i32 to index
    %26 = memref.load %arg3[%24, %25] : memref<2x40xf32, #tpu.memory_space<smem>>
    %c1_i32 = arith.constant 1 : i32
    %27 = arith.addi %22, %c1_i32 : i32
    %28 = arith.index_cast %arg0 : i32 to index
    %29 = arith.index_cast %27 : i32 to index
    %30 = memref.load %arg3[%28, %29] : memref<2x40xf32, #tpu.memory_space<smem>>
    %c2_i32 = arith.constant 2 : i32
    %31 = arith.addi %22, %c2_i32 : i32
    %32 = arith.index_cast %arg0 : i32 to index
    %33 = arith.index_cast %31 : i32 to index
    %34 = memref.load %arg3[%32, %33] : memref<2x40xf32, #tpu.memory_space<smem>>
    %c3_i32 = arith.constant 3 : i32
    %35 = arith.addi %22, %c3_i32 : i32
    %36 = arith.index_cast %arg0 : i32 to index
    %37 = arith.index_cast %35 : i32 to index
    %38 = memref.load %arg3[%36, %37] : memref<2x40xf32, #tpu.memory_space<smem>>
    %c4_i32 = arith.constant 4 : i32
    %39 = arith.addi %22, %c4_i32 : i32
    %40 = arith.index_cast %arg0 : i32 to index
    %41 = arith.index_cast %39 : i32 to index
    %42 = memref.load %arg3[%40, %41] : memref<2x40xf32, #tpu.memory_space<smem>>
    %43 = vector.broadcast %26 : f32 to vector<1x256xf32>
    %44 = arith.maximumf %9, %43 : vector<1x256xf32>
    %45 = vector.broadcast %34 : f32 to vector<1x256xf32>
    %46 = arith.minimumf %11, %45 : vector<1x256xf32>
    %47 = vector.broadcast %30 : f32 to vector<1x256xf32>
    %48 = arith.maximumf %13, %47 : vector<1x256xf32>
    %49 = vector.broadcast %38 : f32 to vector<1x256xf32>
    %50 = arith.minimumf %15, %49 : vector<1x256xf32>
    %51 = arith.subf %46, %44 : vector<1x256xf32>
    %52 = arith.subf %50, %48 : vector<1x256xf32>
    %53 = arith.mulf %51, %52 : vector<1x256xf32>
    %54 = arith.cmpf olt, %44, %46 : vector<1x256xf32>
    %55 = arith.cmpf olt, %48, %50 : vector<1x256xf32>
    %56 = arith.andi %54, %55 : vector<1x256xi1>
    %cst_5 = arith.constant 1.700000e+00 : f32
    %57 = vector.broadcast %cst_5 : f32 to vector<1x256xf32>
    %58 = arith.mulf %53, %57 : vector<1x256xf32>
    %59 = vector.broadcast %42 : f32 to vector<1x256xf32>
    %60 = arith.addf %20, %59 : vector<1x256xf32>
    %61 = arith.cmpf ogt, %58, %60 : vector<1x256xf32>
    %62 = arith.andi %56, %61 : vector<1x256xi1>
    %63 = arith.ori %21, %62 : vector<1x256xi1>
    %c1_i32_6 = arith.constant 1 : i32
    %c5_i32_7 = arith.constant 5 : i32
    %64 = arith.muli %c1_i32_6, %c5_i32_7 : i32
    %c0_i32_8 = arith.constant 0 : i32
    %65 = arith.addi %64, %c0_i32_8 : i32
    %66 = arith.index_cast %arg0 : i32 to index
    %67 = arith.index_cast %65 : i32 to index
    %68 = memref.load %arg3[%66, %67] : memref<2x40xf32, #tpu.memory_space<smem>>
    %c1_i32_9 = arith.constant 1 : i32
    %69 = arith.addi %64, %c1_i32_9 : i32
    %70 = arith.index_cast %arg0 : i32 to index
    %71 = arith.index_cast %69 : i32 to index
    %72 = memref.load %arg3[%70, %71] : memref<2x40xf32, #tpu.memory_space<smem>>
    %c2_i32_10 = arith.constant 2 : i32
    %73 = arith.addi %64, %c2_i32_10 : i32
    %74 = arith.index_cast %arg0 : i32 to index
    %75 = arith.index_cast %73 : i32 to index
    %76 = memref.load %arg3[%74, %75] : memref<2x40xf32, #tpu.memory_space<smem>>
    %c3_i32_11 = arith.constant 3 : i32
    %77 = arith.addi %64, %c3_i32_11 : i32
    %78 = arith.index_cast %arg0 : i32 to index
    %79 = arith.index_cast %77 : i32 to index
    %80 = memref.load %arg3[%78, %79] : memref<2x40xf32, #tpu.memory_space<smem>>
    %c4_i32_12 = arith.constant 4 : i32
    %81 = arith.addi %64, %c4_i32_12 : i32
    %82 = arith.index_cast %arg0 : i32 to index
    %83 = arith.index_cast %81 : i32 to index
    %84 = memref.load %arg3[%82, %83] : memref<2x40xf32, #tpu.memory_space<smem>>
    %85 = vector.broadcast %68 : f32 to vector<1x256xf32>
    %86 = arith.maximumf %9, %85 : vector<1x256xf32>
    %87 = vector.broadcast %76 : f32 to vector<1x256xf32>
    %88 = arith.minimumf %11, %87 : vector<1x256xf32>
    %89 = vector.broadcast %72 : f32 to vector<1x256xf32>
    %90 = arith.maximumf %13, %89 : vector<1x256xf32>
    %91 = vector.broadcast %80 : f32 to vector<1x256xf32>
    %92 = arith.minimumf %15, %91 : vector<1x256xf32>
    %93 = arith.subf %88, %86 : vector<1x256xf32>
    %94 = arith.subf %92, %90 : vector<1x256xf32>
    %95 = arith.mulf %93, %94 : vector<1x256xf32>
    %96 = arith.cmpf olt, %86, %88 : vector<1x256xf32>
    %97 = arith.cmpf olt, %90, %92 : vector<1x256xf32>
    %98 = arith.andi %96, %97 : vector<1x256xi1>
    %cst_13 = arith.constant 1.700000e+00 : f32
    %99 = vector.broadcast %cst_13 : f32 to vector<1x256xf32>
    %100 = arith.mulf %95, %99 : vector<1x256xf32>
    %101 = vector.broadcast %84 : f32 to vector<1x256xf32>
    %102 = arith.addf %20, %101 : vector<1x256xf32>
    %103 = arith.cmpf ogt, %100, %102 : vector<1x256xf32>
    %104 = arith.andi %98, %103 : vector<1x256xi1>
    %105 = arith.ori %63, %104 : vector<1x256xi1>
    %c2_i32_14 = arith.constant 2 : i32
    %c5_i32_15 = arith.constant 5 : i32
    %106 = arith.muli %c2_i32_14, %c5_i32_15 : i32
    %c0_i32_16 = arith.constant 0 : i32
    %107 = arith.addi %106, %c0_i32_16 : i32
    %108 = arith.index_cast %arg0 : i32 to index
    %109 = arith.index_cast %107 : i32 to index
    %110 = memref.load %arg3[%108, %109] : memref<2x40xf32, #tpu.memory_space<smem>>
    %c1_i32_17 = arith.constant 1 : i32
    %111 = arith.addi %106, %c1_i32_17 : i32
    %112 = arith.index_cast %arg0 : i32 to index
    %113 = arith.index_cast %111 : i32 to index
    %114 = memref.load %arg3[%112, %113] : memref<2x40xf32, #tpu.memory_space<smem>>
    %c2_i32_18 = arith.constant 2 : i32
    %115 = arith.addi %106, %c2_i32_18 : i32
    %116 = arith.index_cast %arg0 : i32 to index
    %117 = arith.index_cast %115 : i32 to index
    %118 = memref.load %arg3[%116, %117] : memref<2x40xf32, #tpu.memory_space<smem>>
    %c3_i32_19 = arith.constant 3 : i32
    %119 = arith.addi %106, %c3_i32_19 : i32
    %120 = arith.index_cast %arg0 : i32 to index
    %121 = arith.index_cast %119 : i32 to index
    %122 = memref.load %arg3[%120, %121] : memref<2x40xf32, #tpu.memory_space<smem>>
    %c4_i32_20 = arith.constant 4 : i32
    %123 = arith.addi %106, %c4_i32_20 : i32
    %124 = arith.index_cast %arg0 : i32 to index
    %125 = arith.index_cast %123 : i32 to index
    %126 = memref.load %arg3[%124, %125] : memref<2x40xf32, #tpu.memory_space<smem>>
    %127 = vector.broadcast %110 : f32 to vector<1x256xf32>
    %128 = arith.maximumf %9, %127 : vector<1x256xf32>
    %129 = vector.broadcast %118 : f32 to vector<1x256xf32>
    %130 = arith.minimumf %11, %129 : vector<1x256xf32>
    %131 = vector.broadcast %114 : f32 to vector<1x256xf32>
    %132 = arith.maximumf %13, %131 : vector<1x256xf32>
    %133 = vector.broadcast %122 : f32 to vector<1x256xf32>
    %134 = arith.minimumf %15, %133 : vector<1x256xf32>
    %135 = arith.subf %130, %128 : vector<1x256xf32>
    %136 = arith.subf %134, %132 : vector<1x256xf32>
    %137 = arith.mulf %135, %136 : vector<1x256xf32>
    %138 = arith.cmpf olt, %128, %130 : vector<1x256xf32>
    %139 = arith.cmpf olt, %132, %134 : vector<1x256xf32>
    %140 = arith.andi %138, %139 : vector<1x256xi1>
    %cst_21 = arith.constant 1.700000e+00 : f32
    %141 = vector.broadcast %cst_21 : f32 to vector<1x256xf32>
    %142 = arith.mulf %137, %141 : vector<1x256xf32>
    %143 = vector.broadcast %126 : f32 to vector<1x256xf32>
    %144 = arith.addf %20, %143 : vector<1x256xf32>
    %145 = arith.cmpf ogt, %142, %144 : vector<1x256xf32>
    %146 = arith.andi %140, %145 : vector<1x256xi1>
    %147 = arith.ori %105, %146 : vector<1x256xi1>
    %c3_i32_22 = arith.constant 3 : i32
    %c5_i32_23 = arith.constant 5 : i32
    %148 = arith.muli %c3_i32_22, %c5_i32_23 : i32
    %c0_i32_24 = arith.constant 0 : i32
    %149 = arith.addi %148, %c0_i32_24 : i32
    %150 = arith.index_cast %arg0 : i32 to index
    %151 = arith.index_cast %149 : i32 to index
    %152 = memref.load %arg3[%150, %151] : memref<2x40xf32, #tpu.memory_space<smem>>
    %c1_i32_25 = arith.constant 1 : i32
    %153 = arith.addi %148, %c1_i32_25 : i32
    %154 = arith.index_cast %arg0 : i32 to index
    %155 = arith.index_cast %153 : i32 to index
    %156 = memref.load %arg3[%154, %155] : memref<2x40xf32, #tpu.memory_space<smem>>
    %c2_i32_26 = arith.constant 2 : i32
    %157 = arith.addi %148, %c2_i32_26 : i32
    %158 = arith.index_cast %arg0 : i32 to index
    %159 = arith.index_cast %157 : i32 to index
    %160 = memref.load %arg3[%158, %159] : memref<2x40xf32, #tpu.memory_space<smem>>
    %c3_i32_27 = arith.constant 3 : i32
    %161 = arith.addi %148, %c3_i32_27 : i32
    %162 = arith.index_cast %arg0 : i32 to index
    %163 = arith.index_cast %161 : i32 to index
    %164 = memref.load %arg3[%162, %163] : memref<2x40xf32, #tpu.memory_space<smem>>
    %c4_i32_28 = arith.constant 4 : i32
    %165 = arith.addi %148, %c4_i32_28 : i32
    %166 = arith.index_cast %arg0 : i32 to index
    %167 = arith.index_cast %165 : i32 to index
    %168 = memref.load %arg3[%166, %167] : memref<2x40xf32, #tpu.memory_space<smem>>
    %169 = vector.broadcast %152 : f32 to vector<1x256xf32>
    %170 = arith.maximumf %9, %169 : vector<1x256xf32>
    %171 = vector.broadcast %160 : f32 to vector<1x256xf32>
    %172 = arith.minimumf %11, %171 : vector<1x256xf32>
    %173 = vector.broadcast %156 : f32 to vector<1x256xf32>
    %174 = arith.maximumf %13, %173 : vector<1x256xf32>
    %175 = vector.broadcast %164 : f32 to vector<1x256xf32>
    %176 = arith.minimumf %15, %175 : vector<1x256xf32>
    %177 = arith.subf %172, %170 : vector<1x256xf32>
    %178 = arith.subf %176, %174 : vector<1x256xf32>
    %179 = arith.mulf %177, %178 : vector<1x256xf32>
    %180 = arith.cmpf olt, %170, %172 : vector<1x256xf32>
    %181 = arith.cmpf olt, %174, %176 : vector<1x256xf32>
    %182 = arith.andi %180, %181 : vector<1x256xi1>
    %cst_29 = arith.constant 1.700000e+00 : f32
    %183 = vector.broadcast %cst_29 : f32 to vector<1x256xf32>
    %184 = arith.mulf %179, %183 : vector<1x256xf32>
    %185 = vector.broadcast %168 : f32 to vector<1x256xf32>
    %186 = arith.addf %20, %185 : vector<1x256xf32>
    %187 = arith.cmpf ogt, %184, %186 : vector<1x256xf32>
    %188 = arith.andi %182, %187 : vector<1x256xi1>
    %189 = arith.ori %147, %188 : vector<1x256xi1>
    %c4_i32_30 = arith.constant 4 : i32
    %c5_i32_31 = arith.constant 5 : i32
    %190 = arith.muli %c4_i32_30, %c5_i32_31 : i32
    %c0_i32_32 = arith.constant 0 : i32
    %191 = arith.addi %190, %c0_i32_32 : i32
    %192 = arith.index_cast %arg0 : i32 to index
    %193 = arith.index_cast %191 : i32 to index
    %194 = memref.load %arg3[%192, %193] : memref<2x40xf32, #tpu.memory_space<smem>>
    %c1_i32_33 = arith.constant 1 : i32
    %195 = arith.addi %190, %c1_i32_33 : i32
    %196 = arith.index_cast %arg0 : i32 to index
    %197 = arith.index_cast %195 : i32 to index
    %198 = memref.load %arg3[%196, %197] : memref<2x40xf32, #tpu.memory_space<smem>>
    %c2_i32_34 = arith.constant 2 : i32
    %199 = arith.addi %190, %c2_i32_34 : i32
    %200 = arith.index_cast %arg0 : i32 to index
    %201 = arith.index_cast %199 : i32 to index
    %202 = memref.load %arg3[%200, %201] : memref<2x40xf32, #tpu.memory_space<smem>>
    %c3_i32_35 = arith.constant 3 : i32
    %203 = arith.addi %190, %c3_i32_35 : i32
    %204 = arith.index_cast %arg0 : i32 to index
    %205 = arith.index_cast %203 : i32 to index
    %206 = memref.load %arg3[%204, %205] : memref<2x40xf32, #tpu.memory_space<smem>>
    %c4_i32_36 = arith.constant 4 : i32
    %207 = arith.addi %190, %c4_i32_36 : i32
    %208 = arith.index_cast %arg0 : i32 to index
    %209 = arith.index_cast %207 : i32 to index
    %210 = memref.load %arg3[%208, %209] : memref<2x40xf32, #tpu.memory_space<smem>>
    %211 = vector.broadcast %194 : f32 to vector<1x256xf32>
    %212 = arith.maximumf %9, %211 : vector<1x256xf32>
    %213 = vector.broadcast %202 : f32 to vector<1x256xf32>
    %214 = arith.minimumf %11, %213 : vector<1x256xf32>
    %215 = vector.broadcast %198 : f32 to vector<1x256xf32>
    %216 = arith.maximumf %13, %215 : vector<1x256xf32>
    %217 = vector.broadcast %206 : f32 to vector<1x256xf32>
    %218 = arith.minimumf %15, %217 : vector<1x256xf32>
    %219 = arith.subf %214, %212 : vector<1x256xf32>
    %220 = arith.subf %218, %216 : vector<1x256xf32>
    %221 = arith.mulf %219, %220 : vector<1x256xf32>
    %222 = arith.cmpf olt, %212, %214 : vector<1x256xf32>
    %223 = arith.cmpf olt, %216, %218 : vector<1x256xf32>
    %224 = arith.andi %222, %223 : vector<1x256xi1>
    %cst_37 = arith.constant 1.700000e+00 : f32
    %225 = vector.broadcast %cst_37 : f32 to vector<1x256xf32>
    %226 = arith.mulf %221, %225 : vector<1x256xf32>
    %227 = vector.broadcast %210 : f32 to vector<1x256xf32>
    %228 = arith.addf %20, %227 : vector<1x256xf32>
    %229 = arith.cmpf ogt, %226, %228 : vector<1x256xf32>
    %230 = arith.andi %224, %229 : vector<1x256xi1>
    %231 = arith.ori %189, %230 : vector<1x256xi1>
    %c5_i32_38 = arith.constant 5 : i32
    %c5_i32_39 = arith.constant 5 : i32
    %232 = arith.muli %c5_i32_38, %c5_i32_39 : i32
    %c0_i32_40 = arith.constant 0 : i32
    %233 = arith.addi %232, %c0_i32_40 : i32
    %234 = arith.index_cast %arg0 : i32 to index
    %235 = arith.index_cast %233 : i32 to index
    %236 = memref.load %arg3[%234, %235] : memref<2x40xf32, #tpu.memory_space<smem>>
    %c1_i32_41 = arith.constant 1 : i32
    %237 = arith.addi %232, %c1_i32_41 : i32
    %238 = arith.index_cast %arg0 : i32 to index
    %239 = arith.index_cast %237 : i32 to index
    %240 = memref.load %arg3[%238, %239] : memref<2x40xf32, #tpu.memory_space<smem>>
    %c2_i32_42 = arith.constant 2 : i32
    %241 = arith.addi %232, %c2_i32_42 : i32
    %242 = arith.index_cast %arg0 : i32 to index
    %243 = arith.index_cast %241 : i32 to index
    %244 = memref.load %arg3[%242, %243] : memref<2x40xf32, #tpu.memory_space<smem>>
    %c3_i32_43 = arith.constant 3 : i32
    %245 = arith.addi %232, %c3_i32_43 : i32
    %246 = arith.index_cast %arg0 : i32 to index
    %247 = arith.index_cast %245 : i32 to index
    %248 = memref.load %arg3[%246, %247] : memref<2x40xf32, #tpu.memory_space<smem>>
    %c4_i32_44 = arith.constant 4 : i32
    %249 = arith.addi %232, %c4_i32_44 : i32
    %250 = arith.index_cast %arg0 : i32 to index
    %251 = arith.index_cast %249 : i32 to index
    %252 = memref.load %arg3[%250, %251] : memref<2x40xf32, #tpu.memory_space<smem>>
    %253 = vector.broadcast %236 : f32 to vector<1x256xf32>
    %254 = arith.maximumf %9, %253 : vector<1x256xf32>
    %255 = vector.broadcast %244 : f32 to vector<1x256xf32>
    %256 = arith.minimumf %11, %255 : vector<1x256xf32>
    %257 = vector.broadcast %240 : f32 to vector<1x256xf32>
    %258 = arith.maximumf %13, %257 : vector<1x256xf32>
    %259 = vector.broadcast %248 : f32 to vector<1x256xf32>
    %260 = arith.minimumf %15, %259 : vector<1x256xf32>
    %261 = arith.subf %256, %254 : vector<1x256xf32>
    %262 = arith.subf %260, %258 : vector<1x256xf32>
    %263 = arith.mulf %261, %262 : vector<1x256xf32>
    %264 = arith.cmpf olt, %254, %256 : vector<1x256xf32>
    %265 = arith.cmpf olt, %258, %260 : vector<1x256xf32>
    %266 = arith.andi %264, %265 : vector<1x256xi1>
    %cst_45 = arith.constant 1.700000e+00 : f32
    %267 = vector.broadcast %cst_45 : f32 to vector<1x256xf32>
    %268 = arith.mulf %263, %267 : vector<1x256xf32>
    %269 = vector.broadcast %252 : f32 to vector<1x256xf32>
    %270 = arith.addf %20, %269 : vector<1x256xf32>
    %271 = arith.cmpf ogt, %268, %270 : vector<1x256xf32>
    %272 = arith.andi %266, %271 : vector<1x256xi1>
    %273 = arith.ori %231, %272 : vector<1x256xi1>
    %c6_i32 = arith.constant 6 : i32
    %c5_i32_46 = arith.constant 5 : i32
    %274 = arith.muli %c6_i32, %c5_i32_46 : i32
    %c0_i32_47 = arith.constant 0 : i32
    %275 = arith.addi %274, %c0_i32_47 : i32
    %276 = arith.index_cast %arg0 : i32 to index
    %277 = arith.index_cast %275 : i32 to index
    %278 = memref.load %arg3[%276, %277] : memref<2x40xf32, #tpu.memory_space<smem>>
    %c1_i32_48 = arith.constant 1 : i32
    %279 = arith.addi %274, %c1_i32_48 : i32
    %280 = arith.index_cast %arg0 : i32 to index
    %281 = arith.index_cast %279 : i32 to index
    %282 = memref.load %arg3[%280, %281] : memref<2x40xf32, #tpu.memory_space<smem>>
    %c2_i32_49 = arith.constant 2 : i32
    %283 = arith.addi %274, %c2_i32_49 : i32
    %284 = arith.index_cast %arg0 : i32 to index
    %285 = arith.index_cast %283 : i32 to index
    %286 = memref.load %arg3[%284, %285] : memref<2x40xf32, #tpu.memory_space<smem>>
    %c3_i32_50 = arith.constant 3 : i32
    %287 = arith.addi %274, %c3_i32_50 : i32
    %288 = arith.index_cast %arg0 : i32 to index
    %289 = arith.index_cast %287 : i32 to index
    %290 = memref.load %arg3[%288, %289] : memref<2x40xf32, #tpu.memory_space<smem>>
    %c4_i32_51 = arith.constant 4 : i32
    %291 = arith.addi %274, %c4_i32_51 : i32
    %292 = arith.index_cast %arg0 : i32 to index
    %293 = arith.index_cast %291 : i32 to index
    %294 = memref.load %arg3[%292, %293] : memref<2x40xf32, #tpu.memory_space<smem>>
    %295 = vector.broadcast %278 : f32 to vector<1x256xf32>
    %296 = arith.maximumf %9, %295 : vector<1x256xf32>
    %297 = vector.broadcast %286 : f32 to vector<1x256xf32>
    %298 = arith.minimumf %11, %297 : vector<1x256xf32>
    %299 = vector.broadcast %282 : f32 to vector<1x256xf32>
    %300 = arith.maximumf %13, %299 : vector<1x256xf32>
    %301 = vector.broadcast %290 : f32 to vector<1x256xf32>
    %302 = arith.minimumf %15, %301 : vector<1x256xf32>
    %303 = arith.subf %298, %296 : vector<1x256xf32>
    %304 = arith.subf %302, %300 : vector<1x256xf32>
    %305 = arith.mulf %303, %304 : vector<1x256xf32>
    %306 = arith.cmpf olt, %296, %298 : vector<1x256xf32>
    %307 = arith.cmpf olt, %300, %302 : vector<1x256xf32>
    %308 = arith.andi %306, %307 : vector<1x256xi1>
    %cst_52 = arith.constant 1.700000e+00 : f32
    %309 = vector.broadcast %cst_52 : f32 to vector<1x256xf32>
    %310 = arith.mulf %305, %309 : vector<1x256xf32>
    %311 = vector.broadcast %294 : f32 to vector<1x256xf32>
    %312 = arith.addf %20, %311 : vector<1x256xf32>
    %313 = arith.cmpf ogt, %310, %312 : vector<1x256xf32>
    %314 = arith.andi %308, %313 : vector<1x256xi1>
    %315 = arith.ori %273, %314 : vector<1x256xi1>
    %c7_i32 = arith.constant 7 : i32
    %c5_i32_53 = arith.constant 5 : i32
    %316 = arith.muli %c7_i32, %c5_i32_53 : i32
    %c0_i32_54 = arith.constant 0 : i32
    %317 = arith.addi %316, %c0_i32_54 : i32
    %318 = arith.index_cast %arg0 : i32 to index
    %319 = arith.index_cast %317 : i32 to index
    %320 = memref.load %arg3[%318, %319] : memref<2x40xf32, #tpu.memory_space<smem>>
    %c1_i32_55 = arith.constant 1 : i32
    %321 = arith.addi %316, %c1_i32_55 : i32
    %322 = arith.index_cast %arg0 : i32 to index
    %323 = arith.index_cast %321 : i32 to index
    %324 = memref.load %arg3[%322, %323] : memref<2x40xf32, #tpu.memory_space<smem>>
    %c2_i32_56 = arith.constant 2 : i32
    %325 = arith.addi %316, %c2_i32_56 : i32
    %326 = arith.index_cast %arg0 : i32 to index
    %327 = arith.index_cast %325 : i32 to index
    %328 = memref.load %arg3[%326, %327] : memref<2x40xf32, #tpu.memory_space<smem>>
    %c3_i32_57 = arith.constant 3 : i32
    %329 = arith.addi %316, %c3_i32_57 : i32
    %330 = arith.index_cast %arg0 : i32 to index
    %331 = arith.index_cast %329 : i32 to index
    %332 = memref.load %arg3[%330, %331] : memref<2x40xf32, #tpu.memory_space<smem>>
    %c4_i32_58 = arith.constant 4 : i32
    %333 = arith.addi %316, %c4_i32_58 : i32
    %334 = arith.index_cast %arg0 : i32 to index
    %335 = arith.index_cast %333 : i32 to index
    %336 = memref.load %arg3[%334, %335] : memref<2x40xf32, #tpu.memory_space<smem>>
    %337 = vector.broadcast %320 : f32 to vector<1x256xf32>
    %338 = arith.maximumf %9, %337 : vector<1x256xf32>
    %339 = vector.broadcast %328 : f32 to vector<1x256xf32>
    %340 = arith.minimumf %11, %339 : vector<1x256xf32>
    %341 = vector.broadcast %324 : f32 to vector<1x256xf32>
    %342 = arith.maximumf %13, %341 : vector<1x256xf32>
    %343 = vector.broadcast %332 : f32 to vector<1x256xf32>
    %344 = arith.minimumf %15, %343 : vector<1x256xf32>
    %345 = arith.subf %340, %338 : vector<1x256xf32>
    %346 = arith.subf %344, %342 : vector<1x256xf32>
    %347 = arith.mulf %345, %346 : vector<1x256xf32>
    %348 = arith.cmpf olt, %338, %340 : vector<1x256xf32>
    %349 = arith.cmpf olt, %342, %344 : vector<1x256xf32>
    %350 = arith.andi %348, %349 : vector<1x256xi1>
    %cst_59 = arith.constant 1.700000e+00 : f32
    %351 = vector.broadcast %cst_59 : f32 to vector<1x256xf32>
    %352 = arith.mulf %347, %351 : vector<1x256xf32>
    %353 = vector.broadcast %336 : f32 to vector<1x256xf32>
    %354 = arith.addf %20, %353 : vector<1x256xf32>
    %355 = arith.cmpf ogt, %352, %354 : vector<1x256xf32>
    %356 = arith.andi %350, %355 : vector<1x256xi1>
    %357 = arith.ori %315, %356 : vector<1x256xi1>
    %c8_i32 = arith.constant 8 : i32
    %358 = arith.extui %357 : vector<1x256xi1> to vector<1x256xi32>
    %359 = arith.sitofp %358 : vector<1x256xi32> to vector<1x256xf32>
    %cst_60 = arith.constant 1.000000e+00 : f32
    %360 = vector.broadcast %cst_60 : f32 to vector<1x256xf32>
    %361 = arith.subf %360, %359 : vector<1x256xf32>
    %362 = vector.shape_cast %361 : vector<1x256xf32> to vector<1x1x256xf32>
    %c0_61 = arith.constant 0 : index
    %c0_62 = arith.constant 0 : index
    %c0_63 = arith.constant 0 : index
    %363 = vector.load %arg4[%c0_61, %c0_62, %c0_63] : memref<1x1x256xf32, #tpu.memory_space<vmem>>, vector<1x1x256xf32>
    tpu.vector_store %arg4[%c0_61, %c0_62, %c0_63], %362 {strides = array<i32>} : memref<1x1x256xf32, #tpu.memory_space<vmem>>, vector<1x1x256xf32>,
    return
  }
  func.func @transform_0(%arg0: i32, %arg1: i32) -> (i32, i32, i32) {
    %c0_i32 = arith.constant 0 : i32
    %c0_i32_0 = arith.constant 0 : i32
    return %arg0, %c0_i32, %arg1 : i32, i32, i32
  }
  func.func @transform_1(%arg0: i32, %arg1: i32) -> (i32, i32) {
    %c0_i32 = arith.constant 0 : i32
    %c0_i32_0 = arith.constant 0 : i32
    %c0_i32_1 = arith.constant 0 : i32
    return %c0_i32, %c0_i32_0 : i32, i32
  }
  func.func @transform_2(%arg0: i32, %arg1: i32) -> (i32, i32, i32) {
    %c0_i32 = arith.constant 0 : i32
    %c0_i32_0 = arith.constant 0 : i32
    return %arg0, %c0_i32, %arg1 : i32, i32, i32
  }
}

</mosaic_0001>

<bundles_post_ra>
// kernel: tpu_custom_call.1
= control target key start
LH: loop header
LB: loop body
LE: loop exit
PB: predicated region body
PF: predicated region fallthrough
CT: control target
= control target key end

     0   :  { %7 = vsyncpa [#allocation3], 0  ;;  %s1584_s0 = inlined_call_operand.hbm [shape: f32[2,4,256], index: 0, kind: input, shape index: {}]   ;;  %s1585_s1 = inlined_call_operand.vmem [shape: f32[2,40], index: 1, kind: input, shape index: {}]   ;;  %s1586_s2 = inlined_call_operand.hbm [shape: f32[2,1,256], index: 2, kind: output, shape index: {}]  }
   0x1   :  { %9 = vsyncpa [#allocation3 + $0x1], 0 }
   0x2   :  { %10 = vsyncpa [#allocation5], 0 }
   0x3   :  { %11 = vsyncpa [#allocation4], 0 }
   0x4   :  { %13 = vsyncpa [#allocation4 + $0x1], 0  ;;  %s956_s9 = smov 0   ;;  %s958_s10 = smov 0  }
   0x5   :  { %s960_s11 = smov 0   ;;  %s962_s12 = smov 0  }
   0x6   :  { %s964_s13 = smov 0   ;;  %s966_s14 = smov 0  }
   0x7 LB: > { %s680_s15 = sadd.s32 4294967295, %s933_s14   ;;  %s681_s16 = sadd.s32 4294967294, %s933_s14   ;;  %s933_s14 = sphi %s966_s14, %s19_s14   ;;  %s929_s13 = sphi %s964_s13, %s1654_s13   ;;  %s925_s12 = sphi %s962_s12, %s1653_s12   ;;  %s921_s11 = sphi %s960_s11, %s1652_s11   ;;  %s917_s10 = sphi %s958_s10, %s1651_s10   ;;  %s913_s9 = sphi %s956_s9, %s1650_s9  }
   0x8   : > { %p53_p0 = scmp.ne.s32.totalorder %s917_s10, %s913_s9  ;;  %p990_p1 = scmp.eq.s32.totalorder %s680_s15, 0 }
   0x9   : > { %p994_p2 = scmp.eq.s32.totalorder %s680_s15, 1  ;;  %p106_p3 = scmp.eq.s32.totalorder %s681_s16, 1 }
   0xa   : > { %s1591_s17 = scalar_select %p990_p1, 1, 0 }
   0xb   : > { %p1000_p4 = por %p990_p1, %p53_p0  ;;  %p682_p5 = scmp.ge.s32.totalorder %s933_s14, 1 }
   0xc   : > { %p1005_p6 = por %p106_p3, %p53_p0  ;;  %p113_p7 = scmp.lt.s32.totalorder %s933_s14, 3 }
   0xd   : > { %s1593_s19 = scalar_select %p1000_p4, 1, 0 }
   0xe   : > { %s1594_s20 = scalar_select %p1005_p6, 1, 0 }
   0xf   : > { %s126_s23 = sshll.u32 %s1585_s1, 4  ;;  %p1013_p8 = pnand %p682_p5, %p113_p7  ;;  %s127_s23 = int_to_ptr.vmem [resolvable:$true] %s126_s23 }
  0x10   : > { %s31_s26 = sadd.s32 1, %s929_s13  ;;  %s40_s27 = sadd.s32 1, %s921_s11 }
  0x11   : > { %p734_p10 = pneg %p1013_p8  ;;  %p33_p12 = scmp.ge.s32.totalorder %s31_s26, 2 }
  0x12   : > { %s802_s28 = scalar_lea.vmem %s127_s23, 32  ;;  %p810_p7 = scmp.lt.s32.totalorder %s127_s23, %s127_s23 }
  0x13   : > { %p1022_p11 = pnand %p734_p10, %p990_p1  ;;  %p803_p13 = scmp.ne.s32.totalorder %s127_s23, %s802_s28 }
  0x14   : > { %p811_p6 = scmp.lt.s32.totalorder %s802_s28, %s802_s28 }
  0x15   : > { %p804_p0 = pneg %p1022_p11 }
  0x16   : > { %p812_p9 = por %p811_p6, %p810_p7 }
  0x17   : > { %p805_p3 = pnand %p804_p0, %p803_p13 }
  0x19   : > { %p806_p5 = pneg %p805_p3 }
  0x1b   : > { %p813_p4 = pnand %p812_p9, %p806_p5 }
  0x1d   : > { %816 = shalt.err (!%p813_p4)
}
  0x1e   : > { %s935_s29 = smov [#allocation6]   ;;  %s1656_s26 = smov (%p33_p12, %s31_s26), 0 }
  0x1f   : > { %737 = dma.vmem_to_smem (!%p1022_p11), %s127_s23, 32, %s935_s29, [#allocation5]  }
  0x20   : > { %p47_p10 = scmp.ne.s32.totalorder %s921_s11, %s917_s10  ;;  %p48_p6 = scmp.eq.s32.totalorder %s933_s14, 0 }
  0x21   : > { %s35_s30 = ssub.s32 %s929_s13, %s1656_s26  ;;  %p747_p4 = scmp.lt.s32.totalorder %s933_s14, 2 }
  0x22   : > { %p38_p9 = scmp.eq.s32.totalorder %s35_s30, 0  ;;  %p49_p13 = por %p48_p6, %p47_p10 }
  0x23   : > { %p1042_p0 = por %p994_p2, %p47_p10  ;;  %s137_s4 = sand.u32 1, %s921_s11  }
  0x24   : > { %s1048_s5 = scalar_select %p38_p9, %s921_s11, %s40_s27  }
  0x25   : > { %s1597_s3 = scalar_select %p1042_p0, 1, 0 }
  0x26   : > { %s685_s6 = sshll.u32 %s137_s4, 3  ;;  %s724_s7 = sshll.u32 %s929_s13, 7 }
  0x27   : > { %s1054_s16 = scalar_lea.hbm %s1584_s0, %s724_s7  ;;  %s141_s21 = scalar_lea.vmem [#allocation2], %s685_s6 }
  0x28   : > { %s151_s18 = sshll.u32 %s141_s21, 4  ;;  %p1058_p2 = pnand %p747_p4, %p49_p13  ;;  %s1056_s18 = int_to_ptr.vmem [resolvable:$true] %s151_s18 }
  0x29   : > { %s138_s23 = scalar_lea.sflag [#allocation3], %s137_s4  ;;  %s817_s25 = scalar_lea.hbm %s1054_s16, 128 }
  0x2a   : > { %p818_p11 = scmp.ne.s32.totalorder %s1054_s16, %s817_s25  ;;  %p819_p12 = pneg %p1058_p2 }
  0x2b   : > { %s822_s29 = scalar_lea.hbm %s1584_s0, 256  ;;  %p823_p7 = scmp.lt.u32.totalorder %s1054_s16, %s1584_s0 }
  0x2c   : > { %p820_p3 = pnand %p819_p12, %p818_p11  ;;  %p824_p10 = scmp.lt.u32.totalorder %s822_s29, %s817_s25 }
  0x2d   : > { %p826_p4 = scmp.lt.u32.totalorder %s817_s25, %s1054_s16 }
  0x2e   : > { %p821_p5 = pneg %p820_p3  ;;  %p825_p6 = por %p824_p10, %p823_p7 }
  0x30   : > { %p827_p9 = por %p826_p4, %p825_p6 }
  0x32   : > { %p828_p13 = pnand %p827_p9, %p821_p5 }
  0x34   : > { %831 = shalt.err (!%p828_p13)
}
  0x35   : > { %s832_s4 = scalar_lea.vmem %s1056_s18, 128  ;;  %s936_s7 = smov [#allocation2]  }
  0x36   : > { %p833_p11 = scmp.ne.s32.totalorder %s1056_s18, %s832_s4  ;;  %s837_s8 = sshll.u32 %s936_s7, 4  ;;  %s838_s8 = int_to_ptr.vmem [resolvable:$false] %s837_s8 }
  0x37   : > { %s839_s15 = scalar_lea.vmem %s838_s8, 256  ;;  %p840_p1 = scmp.lt.s32.totalorder %s1056_s18, %s838_s8 }
  0x38   : > { %p835_p3 = pnand %p833_p11, %p819_p12  ;;  %p841_p7 = scmp.lt.s32.totalorder %s839_s15, %s832_s4 }
  0x3a   : > { %p836_p0 = pneg %p835_p3  ;;  %p842_p10 = por %p841_p7, %p840_p1 }
  0x3c   : > { %p843_p6 = pnand %p842_p10, %p836_p0 }
  0x3e   : > { %846 = shalt.err (!%p843_p6)
}
  0x3f   : > { %741 = dma.hbm_to_vmem [thread:$0]  (!%p1058_p2), %s1054_s16, 128, %s1056_s18, %s138_s23  }
  0x40   : > { %160 = sbr.rel (%p1013_p8) target bundleno = 161 (0xa1), region = 28  ;;  %s1090_s21 = sand.u32 (!%p1013_p8), 1, %s917_s10  }
  0x41   : > { %s689_s25 = sshll.u32 (!%p1013_p8), %s1090_s21, 3  ;;  %s163_s27 = scalar_lea.sflag (!%p1013_p8), [#allocation3], %s1090_s21 }
  0x42   : > { %s166_s28 = scalar_lea.vmem (!%p1013_p8), [#allocation2], %s689_s25  ;;  %p1599_p1 = scmp.ne.s32.totalorder (!%p1013_p8), %s1593_s19, 0 }
  0x47   : > { %900 = dma.done.wait (%p1599_p1), %s163_s27, 128  }
  0x48   : > { %902 = vsyncadd (%p1599_p1), %s163_s27, 4294967168  ;;  %p1600_p0 = scmp.ne.s32.totalorder %s1591_s17, 0 }
  0x4a   : > { %904 = dma.done.wait (%p1600_p0), [#allocation5], 32  }
  0x4b   : > { %906 = vsyncadd (%p1600_p0), [#allocation5], 4294967264 }
  0x4c   : > { %175 = sfence }
  0x4d   : > { %v194_v0 = vld [vmem:[%s166_s28] sm:$0xff]  ;;  %s1103_s24 = sshll.u32 %s925_s12, 7  ;;  %v937_v27 = vmov 0   ;;  %p1647_p2 = scmp.ne.s32.totalorder %s1597_s3, 0 }
  0x4e   : > { %v195_v1 = vmul.f32 0.5, %v194_v0  ;;  %s209_s19 = sld [smem:[#allocation6 + %s1103_s24]]  ;;  %s210_s16 = sadd.s32 1, %s1103_s24  ;;  %v692_v4 = vrot.slane %v194_v0, 9 }
  0x4f   : > { %s212_s18 = sadd.s32 2, %s1103_s24  ;;  %s211_s17 = sld [smem:[#allocation6 + %s210_s16]] }
  0x50   : > { %v197_v2 = vrot.slane %v195_v1, 6  ;;  %s213_s22 = sld [smem:[#allocation6 + %s212_s18]]  ;;  %s214_s23 = sadd.s32 3, %s1103_s24  ;;  %v206_v8 = vmul.f32 %v692_v4, %v194_v0 }
  0x51   : > { %s216_s29 = sadd.s32 4, %s1103_s24  ;;  %s215_s30 = sld [smem:[#allocation6 + %s214_s23]] }
  0x52   : > { %v198_v3 = vrot.slane %v197_v2, 4  ;;  %s1110_s6 = sld [smem:[#allocation6 + %s216_s29]]  ;;  %s249_s4 = sadd.s32 5, %s1103_s24  ;;  %v1142_v16 = vmul.f32 0.7, %v206_v8 }
  0x53   : > { %s251_s7 = sadd.s32 6, %s1103_s24  ;;  %s250_s8 = sld [smem:[#allocation6 + %s249_s4]] }
  0x54   : > { %v1114_v5 = vsub.f32 %v194_v0, %v198_v3  ;;  %v218_v6 = vstv %s209_s19  ;;  %s1116_s15 = sld [smem:[#allocation6 + %s251_s7]]  ;;  %v1118_v7 = vadd.f32 %v198_v3, %v194_v0  ;;  %s253_s25 = sadd.s32 7, %s1103_s24 }
  0x55   : > { %s255_s27 = sadd.s32 8, %s1103_s24  ;;  %v222_v10 = vstv %s211_s17  ;;  %s1122_s28 = sld [smem:[#allocation6 + %s253_s25]] }
  0x56   : > { %v220_v9 = vstv %s213_s22  ;;  %s1124_s16 = sld [smem:[#allocation6 + %s255_s27]]  ;;  %v1127_v11 = vmax.f32 %v1114_v5, %v218_v6  ;;  %v223_v13 = vmax.f32 %v1114_v5, %v222_v10  ;;  %s257_s19 = sadd.s32 9, %s1103_s24 }
  0x57   : > { %v1130_v12 = vmin.f32 %v1118_v7, %v220_v9  ;;  %s291_s18 = sadd.s32 10, %s1103_s24  ;;  %v224_v14 = vstv %s215_s30  ;;  %s1135_s22 = sld [smem:[#allocation6 + %s257_s19]] }
  0x58   : > { %s1137_s17 = sld [smem:[#allocation6 + %s291_s18]]  ;;  %v225_v15 = vmin.f32 %v1118_v7, %v224_v14  ;;  %s293_s23 = sadd.s32 11, %s1103_s24  ;;  %v241_v17 = vstv %s1110_s6 }
  0x59   : > { %s295_s29 = sadd.s32 12, %s1103_s24  ;;  %v259_v18 = vstv %s250_s8  ;;  %s1146_s4 = sld [smem:[#allocation6 + %s293_s23]]  ;;  %v226_v20 = vsub.f32 %v1130_v12, %v1127_v11  ;;  %v242_v31 = vadd.f32 %v241_v17, %v1142_v16  ;;  %vm233_vm2 = vcmp.lt.f32.partialorder %v1127_v11, %v1130_v12 }
  0x5a   : > { %v263_v19 = vstv %s1116_s15  ;;  %s1148_s30 = sld [smem:[#allocation6 + %s295_s29]]  ;;  %v227_v21 = vsub.f32 %v225_v15, %v223_v13  ;;  %vm234_vm0 = vcmp.lt.f32.partialorder %v223_v13, %v225_v15  ;;  %v1153_v22 = vmax.f32 %v1114_v5, %v259_v18  ;;  %s297_s7 = sadd.s32 13, %s1103_s24 }
  0x5b   : > { %s299_s6 = sadd.s32 14, %s1103_s24  ;;  %v261_v23 = vstv %s1122_s28  ;;  %v264_v24 = vmax.f32 %v1114_v5, %v263_v19  ;;  %s1160_s8 = sld [smem:[#allocation6 + %s297_s7]]  ;;  %v235_v28 = vsel %vm234_vm0, 1, %v937_v27  ;;  %v696_v44 = vrot.slane %v242_v31, 10 }
  0x5c   : > { %v265_v25 = vstv %s1124_s16  ;;  %s1162_s15 = sld [smem:[#allocation6 + %s299_s6]]  ;;  %v694_v26 = vrot.slane %v227_v21, 9  ;;  %v1166_v29 = vmin.f32 %v1118_v7, %v261_v23  ;;  %s333_s25 = sadd.s32 15, %s1103_s24  ;;  %v695_v37 = vrot.slane %v235_v28, 9 }
  0x5d   : > { %v266_v30 = vmin.f32 %v1118_v7, %v265_v25  ;;  %s335_s27 = sadd.s32 16, %s1103_s24  ;;  %v282_v32 = vstv %s1135_s22  ;;  %s1174_s28 = sld [smem:[#allocation6 + %s333_s25]] }
  0x5e   : > { %v301_v33 = vstv %s1137_s17  ;;  %s1176_s16 = sld [smem:[#allocation6 + %s335_s27]]  ;;  %v232_v34 = vmul.f32 %v694_v26, %v226_v20  ;;  %v267_v35 = vsub.f32 %v1166_v29, %v1153_v22  ;;  %s337_s19 = sadd.s32 17, %s1103_s24  ;;  %v283_v38 = vadd.f32 %v282_v32, %v1142_v16 }
  0x5f   : > { %v268_v36 = vsub.f32 %v266_v30, %v264_v24  ;;  %s339_s18 = sadd.s32 18, %s1103_s24  ;;  %vm275_vm1 = vcmp.lt.f32.partialorder %v264_v24, %v266_v30  ;;  %s1183_s22 = sld [smem:[#allocation6 + %s337_s19]]  ;;  %v1189_v41 = vmax.f32 %v1114_v5, %v301_v33  ;;  %v305_v46 = vstv %s1146_s4 }
  0x60   : > { %s1185_s17 = sld [smem:[#allocation6 + %s339_s18]]  ;;  %v276_v40 = vsel %vm275_vm1, 1, %v937_v27  ;;  %v303_v42 = vstv %s1148_s30  ;;  %s341_s23 = sadd.s32 19, %s1103_s24  ;;  %v240_v43 = vmul.f32 1.7, %v232_v34  ;;  %v306_v49 = vmax.f32 %v1114_v5, %v305_v46 }
  0x61   : > { %v697_v39 = vrot.slane %v268_v36, 9  ;;  %s375_s29 = sadd.s32 20, %s1103_s24  ;;  %v1195_v45 = vmin.f32 %v1118_v7, %v303_v42  ;;  %s1198_s7 = sld [smem:[#allocation6 + %s341_s23]]  ;;  %v698_v48 = vrot.slane %v276_v40, 9  ;;  %v307_v50 = vstv %s1160_s8 }
  0x62   : > { %s1200_s6 = sld [smem:[#allocation6 + %s375_s29]]  ;;  %s377_s30 = sadd.s32 21, %s1103_s24  ;;  %vm1208_vm3 = vcmp.ne.s32.totalorder %v695_v37, 0  ;;  %vm274_vm4 = vcmp.lt.f32.partialorder %v1153_v22, %v1166_v29  ;;  %v699_v52 = vrot.slane %v283_v38, 10  ;;  %v308_v53 = vmin.f32 %v1118_v7, %v307_v50 }
  0x63   : > { %v273_v47 = vmul.f32 %v697_v39, %v267_v35  ;;  %s379_s25 = sadd.s32 22, %s1103_s24  ;;  %s1215_s4 = sld [smem:[#allocation6 + %s377_s30]]  ;;  %v309_v54 = vsub.f32 %v1195_v45, %v1189_v41  ;;  %v324_v55 = vstv %s1162_s15  ;;  %v343_v56 = vstv %s1174_s28  ;;  %vm1302_vm12 = vmand %vm233_vm2, %vm1208_vm3 }
  0x64   : > { %s1217_s27 = sld [smem:[#allocation6 + %s379_s25]]  ;;  %v347_v57 = vstv %s1176_s16  ;;  %s381_s8 = sadd.s32 23, %s1103_s24  ;;  %vm1226_vm5 = vcmp.gt.f32.partialorder %v240_v43, %v696_v44  ;;  %v310_v60 = vsub.f32 %v308_v53, %v306_v49  ;;  %vm317_vm6 = vcmp.lt.f32.partialorder %v306_v49, %v308_v53 }
  0x65   : > { %s383_s19 = sadd.s32 24, %s1103_s24  ;;  %v281_v59 = vmul.f32 1.7, %v273_v47  ;;  %v325_v61 = vadd.f32 %v324_v55, %v1142_v16  ;;  %s1231_s18 = sld [smem:[#allocation6 + %s381_s8]]  ;;  %vm1235_vm7 = vcmp.ne.s32.totalorder %v698_v48, 0  ;;  %v318_v63 = vsel %vm317_vm6, 1, %v937_v27  ;;  %vm248_vm0 = vmand %vm1302_vm12, %vm1226_vm5 }
  0x66   : > { %s1233_s15 = sld [smem:[#allocation6 + %s383_s19]]  ;;  %v1241_v0 = vmax.f32 %v1114_v5, %v343_v56  ;;  %v345_v1 = vstv %s1183_s22  ;;  %s417_s28 = sadd.s32 25, %s1103_s24  ;;  %v700_v2 = vrot.slane %v310_v60, 9  ;;  %vm316_vm8 = vcmp.lt.f32.partialorder %v1189_v41, %v1195_v45  ;;  %vm1319_vm14 = vmand %vm274_vm4, %vm1235_vm7 }
  0x67   : > { %s419_s16 = sadd.s32 26, %s1103_s24  ;;  %v1249_v3 = vmin.f32 %v1118_v7, %v345_v1  ;;  %v348_v4 = vmax.f32 %v1114_v5, %v347_v57  ;;  %s1252_s23 = sld [smem:[#allocation6 + %s417_s28]]  ;;  %v701_v6 = vrot.slane %v318_v63, 9  ;;  %v349_v8 = vstv %s1185_s17 }
  0x68   : > { %s1254_s29 = sld [smem:[#allocation6 + %s419_s16]]  ;;  %v366_v9 = vstv %s1198_s7  ;;  %v385_v10 = vstv %s1200_s6  ;;  %s421_s22 = sadd.s32 27, %s1103_s24  ;;  %vm1261_vm9 = vcmp.gt.f32.partialorder %v281_v59, %v699_v52  ;;  %v315_v14 = vmul.f32 %v700_v2, %v309_v54 }
  0x69   : > { %s423_s30 = sadd.s32 28, %s1103_s24  ;;  %v702_v15 = vrot.slane %v325_v61, 10  ;;  %v350_v17 = vmin.f32 %v1118_v7, %v349_v8  ;;  %s1266_s25 = sld [smem:[#allocation6 + %s421_s22]]  ;;  %v351_v18 = vsub.f32 %v1249_v3, %v1241_v0  ;;  %v1273_v19 = vadd.f32 %v366_v9, %v1142_v16  ;;  %vm289_vm2 = vmand %vm1319_vm14, %vm1261_vm9 }
  0x6a   : > { %s1268_s8 = sld [smem:[#allocation6 + %s423_s30]]  ;;  %v1276_v20 = vmax.f32 %v1114_v5, %v385_v10  ;;  %v387_v21 = vstv %s1217_s27  ;;  %s425_s17 = sadd.s32 29, %s1103_s24  ;;  %v323_v23 = vmul.f32 1.7, %v315_v14  ;;  %vm1288_vm11 = vcmp.ne.s32.totalorder %v701_v6, 0  ;;  %vm1395_vm7 = vmor %vm248_vm0, %vm289_vm2 }
  0x6b   : > { %s459_s7 = sadd.s32 30, %s1103_s24  ;;  %v352_v24 = vsub.f32 %v350_v17, %v348_v4  ;;  %vm359_vm10 = vcmp.lt.f32.partialorder %v348_v4, %v350_v17  ;;  %v1282_v25 = vmin.f32 %v1118_v7, %v387_v21  ;;  %s1284_s6 = sld [smem:[#allocation6 + %s425_s17]]  ;;  %v389_v30 = vstv %s1215_s4  ;;  %vm1366_vm4 = vmand %vm316_vm8, %vm1288_vm11 }
  0x6c   : > { %s1286_s19 = sld [smem:[#allocation6 + %s459_s7]]  ;;  %v360_v28 = vsel %vm359_vm10, 1, %v937_v27  ;;  %v391_v31 = vstv %s1231_s18  ;;  %s461_s27 = sadd.s32 31, %s1103_s24  ;;  %vm358_vm13 = vcmp.lt.f32.partialorder %v1241_v0, %v1249_v3  ;;  %v705_v34 = vrot.slane %v1273_v19, 10 }
  0x6d   : > { %s463_s28 = sadd.s32 32, %s1103_s24  ;;  %v703_v33 = vrot.slane %v352_v24, 9  ;;  %v390_v35 = vmax.f32 %v1114_v5, %v389_v30  ;;  %s1310_s4 = sld [smem:[#allocation6 + %s461_s27]]  ;;  %vm1323_vm15 = vcmp.gt.f32.partialorder %v323_v23, %v702_v15  ;;  %v704_v36 = vrot.slane %v360_v28, 9 }
  0x6e   : > { %s1312_s18 = sld [smem:[#allocation6 + %s463_s28]]  ;;  %v392_v37 = vmin.f32 %v1118_v7, %v391_v31  ;;  %v408_v38 = vstv %s1233_s15  ;;  %s465_s16 = sadd.s32 33, %s1103_s24  ;;  %v393_v22 = vsub.f32 %v1282_v25, %v1276_v20  ;;  %v427_v40 = vstv %s1252_s23  ;;  %vm331_vm5 = vmand %vm1366_vm4, %vm1323_vm15 }
  0x6f   : > { %s467_s22 = sadd.s32 34, %s1103_s24  ;;  %v357_v39 = vmul.f32 %v703_v33, %v351_v18  ;;  %v1334_v29 = vadd.f32 %v408_v38, %v1142_v16  ;;  %s1337_s30 = sld [smem:[#allocation6 + %s465_s16]]  ;;  %v1346_v43 = vmax.f32 %v1114_v5, %v427_v40  ;;  %v429_v44 = vstv %s1266_s25  ;;  %vm1439_vm12 = vmor %vm1395_vm7, %vm331_vm5 }
  0x70   : > { %s1339_s17 = sld [smem:[#allocation6 + %s467_s22]]  ;;  %v394_v42 = vsub.f32 %v392_v37, %v390_v35  ;;  %vm401_vm1 = vcmp.lt.f32.partialorder %v390_v35, %v392_v37  ;;  %s501_s15 = sadd.s32 35, %s1103_s24  ;;  %vm400_vm3 = vcmp.lt.f32.partialorder %v1276_v20, %v1282_v25  ;;  %v1359_v48 = vmin.f32 %v1118_v7, %v429_v44 }
  0x71   : > { %s503_s23 = sadd.s32 36, %s1103_s24  ;;  %v365_v46 = vmul.f32 1.7, %v357_v39  ;;  %v402_v47 = vsel %vm401_vm1, 1, %v937_v27  ;;  %vm1370_vm6 = vcmp.ne.s32.totalorder %v704_v36, 0  ;;  %v431_v52 = vstv %s1254_s29  ;;  %s1376_s25 = sld [smem:[#allocation6 + %s501_s15]] }
  0x72   : > { %v706_v51 = vrot.slane %v394_v42, 9  ;;  %v433_v53 = vstv %s1268_s8  ;;  %s505_s7 = sadd.s32 37, %s1103_s24  ;;  %v707_v54 = vrot.slane %v402_v47, 9  ;;  %v708_v55 = vrot.slane %v1334_v29, 10  ;;  %s1382_s27 = sld [smem:[#allocation6 + %s503_s23]]  ;;  %vm1420_vm10 = vmand %vm358_vm13, %vm1370_vm6 }
  0x73   : > { %v432_v41 = vmax.f32 %v1114_v5, %v431_v52  ;;  %v434_v45 = vmin.f32 %v1118_v7, %v433_v53  ;;  %s507_s28 = sadd.s32 38, %s1103_s24  ;;  %vm1399_vm8 = vcmp.gt.f32.partialorder %v365_v46, %v705_v34  ;;  %v435_v60 = vsub.f32 %v1359_v48, %v1346_v43  ;;  %s1406_s29 = sld [smem:[#allocation6 + %s505_s7]] }
  0x74   : > { %v399_v59 = vmul.f32 %v706_v51, %v393_v22  ;;  %v450_v61 = vstv %s1284_s6  ;;  %s509_s8 = sadd.s32 39, %s1103_s24  ;;  %v469_v63 = vstv %s1286_s19  ;;  %v471_v8 = vstv %s1312_s18  ;;  %s1427_s24 = sld [smem:[#allocation6 + %s507_s28]]  ;;  %vm373_vm14 = vmand %vm1420_vm10, %vm1399_vm8 }
  0x75   : > { %v436_v58 = vsub.f32 %v434_v45, %v432_v41  ;;  %vm443_vm9 = vcmp.lt.f32.partialorder %v432_v41, %v434_v45  ;;  %v451_v62 = vadd.f32 %v450_v61, %v1142_v16  ;;  %v470_v6 = vmax.f32 %v1114_v5, %v469_v63  ;;  %s1429_s6 = sld [smem:[#allocation6 + %s509_s8]]  ;;  %s691_s19 = sshll.u32 %s1090_s21, 1 }
  0x76   : > { %v407_v2 = vmul.f32 1.7, %v399_v59  ;;  %v444_v4 = vsel %vm443_vm9, 1, %v937_v27  ;;  %vm405_vm11 = vcmp.ne.s32.totalorder %v707_v54, 0  ;;  %v472_v0 = vmin.f32 %v1118_v7, %v471_v8  ;;  %s191_s18 = scalar_lea.vmem [#allocation7], %s691_s19  ;;  %s568_s15 = scalar_lea.sflag [#allocation4], %s1090_s21 }
  0x77   : > { %v709_v9 = vrot.slane %v436_v58, 9  ;;  %v710_v10 = vrot.slane %v444_v4, 9  ;;  %vm442_vm13 = vcmp.lt.f32.partialorder %v1346_v43, %v1359_v48  ;;  %v473_v13 = vstv %s1310_s4  ;;  %vm1457_vm15 = vmand %vm400_vm3, %vm405_vm11  ;;  %s725_s4 = sshll.u32 %s925_s12, 5  ;;  %s584_s16 = sshll.u32 %s191_s18, 4  ;;  %s1537_s16 = int_to_ptr.vmem [resolvable:$true] %s584_s16 }
  0x78   : > { %v475_v14 = vstv %s1337_s30  ;;  %v492_v15 = vstv %s1339_s17  ;;  %v711_v18 = vrot.slane %v451_v62, 10  ;;  %v474_v19 = vmax.f32 %v1114_v5, %v473_v13  ;;  %vm1473_vm3 = vmor %vm1439_vm12, %vm373_vm14  ;;  %s1535_s17 = scalar_lea.hbm %s1586_s2, %s725_s4  ;;  %s847_s23 = scalar_lea.vmem %s1537_s16, 32 }
  0x79   : > { %v441_v17 = vmul.f32 %v709_v9, %v435_v60  ;;  %v476_v21 = vmin.f32 %v1118_v7, %v475_v14  ;;  %vm1461_vm0 = vcmp.gt.f32.partialorder %v407_v2, %v708_v55  ;;  %vm1465_vm1 = vcmp.ne.s32.totalorder %v710_v10, 0  ;;  %p848_p8 = scmp.ne.s32.totalorder %s1537_s16, %s847_s23  ;;  %s940_s12 = smov [#allocation7]  }
  0x7a   : > { %v477_v28 = vsub.f32 %v472_v0, %v470_v6  ;;  %v511_v30 = vstv %s1376_s25  ;;  %v493_v20 = vadd.f32 %v492_v15, %v1142_v16  ;;  %v513_v35 = vstv %s1406_s29  ;;  %vm415_vm4 = vmand %vm1457_vm15, %vm1461_vm0  ;;  %s851_s25 = sshll.u32 %s940_s12, 4  ;;  %s852_s25 = int_to_ptr.vmem [resolvable:$false] %s851_s25 }
  0x7b   : > { %v449_v31 = vmul.f32 1.7, %v441_v17  ;;  %v478_v32 = vsub.f32 %v476_v21, %v474_v19  ;;  %vm485_vm2 = vcmp.lt.f32.partialorder %v474_v19, %v476_v21  ;;  %v512_v34 = vmax.f32 %v1114_v5, %v511_v30  ;;  %vm1491_vm7 = vmand %vm442_vm13, %vm1465_vm1  ;;  %p849_p12 = pnand %p848_p8, %p1647_p2  ;;  %s853_s7 = scalar_lea.vmem %s852_s25, 64 }
  0x7c   : > { %v486_v33 = vsel %vm485_vm2, 1, %v937_v27  ;;  %v515_v11 = vstv %s1382_s27  ;;  %vm484_vm6 = vcmp.lt.f32.partialorder %v470_v6, %v472_v0  ;;  %v514_v37 = vmin.f32 %v1118_v7, %v513_v35  ;;  %vm1505_vm9 = vmor %vm1473_vm3, %vm415_vm4  ;;  %p854_p4 = scmp.lt.s32.totalorder %s1537_s16, %s852_s25  ;;  %p855_p9 = scmp.lt.s32.totalorder %s853_s7, %s847_s23 }
  0x7d   : > { %v712_v12 = vrot.slane %v478_v32, 9  ;;  %v713_v36 = vrot.slane %v486_v33, 9  ;;  %vm1495_vm8 = vcmp.gt.f32.partialorder %v449_v31, %v711_v18  ;;  %v516_v22 = vmax.f32 %v1114_v5, %v515_v11  ;;  %p850_p5 = pneg %p849_p12 }
  0x7e   : > { %v517_v29 = vstv %s1427_s24  ;;  %v534_v40 = vstv %s1429_s6  ;;  %v714_v44 = vrot.slane %v493_v20, 10  ;;  %v519_v47 = vsub.f32 %v514_v37, %v512_v34  ;;  %vm457_vm10 = vmand %vm1491_vm7, %vm1495_vm8  ;;  %p856_p13 = por %p855_p9, %p854_p4 }
  0x7f   : > { %v483_v42 = vmul.f32 %v712_v12, %v477_v28  ;;  %vm489_vm5 = vcmp.ne.s32.totalorder %v713_v36, 0  ;;  %v518_v46 = vmin.f32 %v1118_v7, %v517_v29  ;;  %v535_v49 = vadd.f32 %v534_v40, %v1142_v16  ;;  %vm458_vm14 = vmor %vm1505_vm9, %vm457_vm10 }
  0x80   : > { %vm1515_vm12 = vmand %vm484_vm6, %vm489_vm5  ;;  %v550_v51 = vlaneseq  ;;  %v938_v55 = vmov 1966171168   ;;  %vm526_vm15 = vcmp.lt.f32.partialorder %v512_v34, %v514_v37  ;;  %v939_v60 = vmov 0.0   ;;  %p857_p11 = pnand %p856_p13, %p850_p5 }
  0x81   : > { %v491_v5 = vmul.f32 1.7, %v483_v42  ;;  %v520_v48 = vsub.f32 %v518_v46, %v516_v22  ;;  %vm527_vm11 = vcmp.lt.f32.partialorder %v516_v22, %v518_v46  ;;  %v548_v41 = vunpack.c.l.s4 %v938_v55 }
  0x82   : > { %v528_v50 = vsel %vm527_vm11, 1, %v937_v27  ;;  %v717_v27 = vrot.slane %v535_v49, 10  ;;  %v551_v57 = vshrl.u32 %v550_v51, 7  ;;  %vm564_vm8 = vcmp.lt.s32.totalorder %v550_v51, 256 }
  0x83   : > { %vm1520_vm13 = vcmp.gt.f32.partialorder %v491_v5, %v714_v44  ;;  %v715_v53 = vrot.slane %v520_v48, 9  ;;  %v716_v54 = vrot.slane %v528_v50, 9  ;;  %v549_v56 = vunpack.c.0.s8 %v548_v41 }
  0x84   : > { %vm499_vm0 = vmand %vm1515_vm12, %vm1520_vm13 }
  0x85   : > { %v525_v16 = vmul.f32 %v715_v53, %v519_v47  ;;  %vm531_vm1 = vcmp.ne.s32.totalorder %v716_v54, 0  ;;  %vm500_vm3 = vmor %vm458_vm14, %vm499_vm0  ;;  %v552_v59 = vsub.s32 %v549_v56, %v551_v57 }
  0x86   : > { %vm532_vm2 = vmand %vm526_vm15, %vm531_vm1 }
  0x87   : > { %v533_v45 = vmul.f32 1.7, %v525_v16 }
  0x89   : > { %vm540_vm4 = vcmp.gt.f32.partialorder %v533_v45, %v717_v27 }
  0x8a   : > { %vm541_vm6 = vmand %vm532_vm2, %vm540_vm4 }
  0x8b   : > { %vm542_vm7 = vmor %vm500_vm3, %vm541_vm6 }
  0x8c   : > { %v718_v61 = vsel %vm542_vm7, 1.0, %v939_v60 }
  0x8d   : > { %v545_v58 = vsub.f32 1.0, %v718_v61 }
  0x8f   : > { %v553_v62 = vrot.slane %v545_v58, %v552_v59 }
  0x91   : > { %v560_v63 = vrot.slane %v553_v62, %v552_v59 }
  0x93   : > { %566 = vst.msk [vmem:[%s191_s18] sm:$0x3] %vm564_vm8, %v560_v63 }
  0x94   : > { %860 = shalt.err (!%p857_p11)
}
  0x95   : > { %s861_s21 = scalar_lea.hbm %s1535_s17, 32  ;;  %s865_s29 = scalar_lea.hbm %s1586_s2, 64 }
  0x96   : > { %p862_p3 = scmp.ne.s32.totalorder %s1535_s17, %s861_s21  ;;  %p866_p6 = scmp.lt.u32.totalorder %s1535_s17, %s1586_s2 }
  0x97   : > { %p867_p1 = scmp.lt.u32.totalorder %s865_s29, %s861_s21  ;;  %p869_p8 = scmp.lt.u32.totalorder %s861_s21, %s1535_s17 }
  0x98   : > { %p863_p7 = pnand %p862_p3, %p1647_p2 }
  0x99   : > { %p868_p0 = por %p867_p1, %p866_p6 }
  0x9a   : > { %p864_p10 = pneg %p863_p7 }
  0x9b   : > { %p870_p12 = por %p869_p8, %p868_p0 }
  0x9d   : > { %p871_p5 = pnand %p870_p12, %p864_p10 }
  0x9f   : > { %874 = shalt.err (!%p871_p5)
}
  0xa0   : > { %732 = dma.vmem_to_hbm [thread:$0]  (%p1647_p2), %s1537_s16, 32, %s1535_s17, %s568_s15  }
  0xa1 PF: > { %s596_s6 = sand.u32 1, %s913_s9   ;;  %p1648_p4 = scmp.ne.s32.totalorder %s1594_s20, 0 }
  0xa2   : > { %p1649_p9 = scmp.ge.s32.totalorder %s933_s14, 2  ;;  %s597_s19 = scalar_lea.sflag [#allocation4], %s596_s6 }
  0xa4   : > { %p743_p13 = pnand %p1649_p9, %p1648_p4 }
  0xa6   : > { %908 = dma.done.wait (!%p743_p13), %s597_s19, 32  }
  0xa7   : > { %910 = vsyncadd (!%p743_p13), %s597_s19, 4294967264  ;;  %s19_s14 = sadd.s32 1, %s933_s14   ;;  %s1650_s9 = smov %s917_s10 }
  0xa8   : > { %p16_p11 = scmp.ge.s32.totalorder %s19_s14, 4   ;;  %s1651_s10 = smov %s921_s11 }
  0xa9   : > { %s1652_s11 = smov %s1048_s5  ;;  %s1653_s12 = smov %s929_s13 }
  0xaa   : > { %s1654_s13 = smov %s1656_s26  ;;  %18 = sbr.rel (!%p16_p11) target bundleno = 7 (0x7), region = 78 }
  0xb1   :  { %602 = vsyncpa [#allocation3], 1 }
  0xb2   :  { %604 = vsyncpa [#allocation3 + $0x1], 1 }
  0xb3   :  { %605 = vsyncpa [#allocation4], 1 }
  0xb4   :  { %607 = vsyncpa [#allocation4 + $0x1], 1 }
  0xb5   :  { %608 = vsyncpa [#allocation5], 1 }
  0xb6   :  { %610 = vsyncpa [#allocation5 + $0x1], 1 }

</bundles_post_ra>
